<compile_context>
chip_gen: v5e
topology: v5e:2x2
jax: 0.10.0
libtpu: 0.0.40
codegen_flags: <defaults>
</compile_context>

<pallas_src>
import math
from functools import partial

import jax
import jax.numpy as jnp
from jax.experimental import pallas as pl
from jax.experimental.pallas import tpu as pltpu

LANE = 128
SUBLANE = 8


def _round_up(x, m):
    return (x + m - 1) // m * m


# ---------------------------------------------------------------------------
# One-time GCN precompute kernel: h2ᵀ = gcn(Node_attr, A).T, shape [D, Lpad].
# Everything is computed in transposed layout so the hot-path matmul consumes
# a plain row-major [B, D] x [D, Lpad] contraction.
# ---------------------------------------------------------------------------
def gcn_h2t_kernel(node_t_ref, adj_t_ref, w1_t_ref, b1_t_ref, w2_t_ref,
                   b2_t_ref, h2t_ref):
    # s1ᵀ = W1ᵀ @ Node_attrᵀ                            [H, Lp]
    s1t = jnp.dot(w1_t_ref[...], node_t_ref[...],
                  preferred_element_type=jnp.float32)
    # h1ᵀ = s1ᵀ @ Aᵀ + b1ᵀ   (== (A @ (X @ W1) + b1)ᵀ)  [H, Lp]
    h1t = jnp.dot(s1t, adj_t_ref[...],
                  preferred_element_type=jnp.float32) + b1_t_ref[...]
    # dropout(relu(h1)) — dropout is identity in eval / inference mode.
    h1t = jnp.maximum(h1t, 0.0)
    # s2ᵀ = W2ᵀ @ h1ᵀ                                    [D, Lp]
    s2t = jnp.dot(w2_t_ref[...], h1t, preferred_element_type=jnp.float32)
    # h2ᵀ = s2ᵀ @ Aᵀ + b2ᵀ                                [D, Lp]
    h2t_ref[...] = (jnp.dot(s2t, adj_t_ref[...],
                            preferred_element_type=jnp.float32)
                    + b2_t_ref[...]).astype(h2t_ref.dtype)


def precompute_gcn_h2t(node_attr, adj, w1, b1, w2, b2, *,
                       out_dtype=jnp.float32):
    """Runs the GCN chain once; returns h2ᵀ of shape [D, Lpad]."""
    L, E = node_attr.shape
    H = w1.shape[1]
    D = w2.shape[1]
    Lp = _round_up(L, LANE)

    # One-time layout plumbing (outside the hot path): transpose + zero-pad the
    # label axis so every intermediate / store is lane-dense. Zero-padded adj
    # columns contribute nothing to the true label columns.
    node_t = jnp.zeros((E, Lp), jnp.float32).at[:, :L].set(node_attr.T)
    adj_t = jnp.zeros((Lp, Lp), jnp.float32).at[:L, :L].set(adj.T)
    w1_t = w1.T.astype(jnp.float32)              # [H, E]
    b1_t = b1.reshape(-1, 1).astype(jnp.float32)  # [H, 1]
    w2_t = w2.T.astype(jnp.float32)              # [D, H]
    b2_t = b2.reshape(-1, 1).astype(jnp.float32)  # [D, 1]

    vmem = lambda: pl.BlockSpec(memory_space=pltpu.MemorySpace.VMEM)
    h2t = pl.pallas_call(
        gcn_h2t_kernel,
        out_shape=jax.ShapeDtypeStruct((D, Lp), jnp.float32),
        in_specs=[vmem() for _ in range(6)],
        out_specs=vmem(),
    )(node_t, adj_t, w1_t, b1_t, w2_t, b2_t)
    return h2t.astype(out_dtype)


# ---------------------------------------------------------------------------
# Hot-path kernel: out = bert_pooled @ h2ᵀ  — a single lane-dense matmul.
# (Biases b1/b2 are already folded into the precomputed h2ᵀ.)
# ---------------------------------------------------------------------------
def bert_proj_kernel(bert_ref, h2t_ref, out_ref):
    x = bert_ref[...].astype(h2t_ref.dtype)      # optional bf16 MXU feed
    out_ref[...] = jnp.dot(x, h2t_ref[...],
                           preferred_element_type=jnp.float32
                           ).astype(out_ref.dtype)


def bert_gcn_project(bert_pooled, h2t, label_num, *, block_b=256):
    B, D = bert_pooled.shape
    Lp = h2t.shape[1]

    # Batch tiling: sublane-aligned row block, parallel grid over batch so v7x
    # can shard across both TensorCores when B is large.
    tb = min(_round_up(B, SUBLANE), block_b)
    Bp = _round_up(B, tb)
    if Bp != B:
        bert_pooled = jnp.zeros((Bp, D), bert_pooled.dtype).at[:B].set(
            bert_pooled)

    cost = pl.CostEstimate(
        flops=2 * Bp * D * Lp,
        transcendentals=0,
        bytes_accessed=(bert_pooled.dtype.itemsize * Bp * D
                        + h2t.dtype.itemsize * D * Lp
                        + 4 * Bp * Lp))

    out = pl.pallas_call(
        bert_proj_kernel,
        out_shape=jax.ShapeDtypeStruct((Bp, Lp), jnp.float32),
        grid_spec=pl.GridSpec(
            grid=(Bp // tb,),
            in_specs=[pl.BlockSpec((tb, D), lambda i: (i, 0)),
                      pl.BlockSpec((D, Lp), lambda i: (0, 0))],
            out_specs=pl.BlockSpec((tb, Lp), lambda i: (i, 0))),
        compiler_params=pltpu.CompilerParams(
            dimension_semantics=("parallel",)),
        cost_estimate=cost,
    )(bert_pooled, h2t)
    return out[:B, :label_num]


def bert_gcn_forward(bert_pooled, node_attr, adj, w1, b1, w2, b2, *,
                     mxu_dtype=jnp.float32):
    """Full forward: gcn output precompute + bert_pooled @ gcn_outᵀ."""
    h2t = precompute_gcn_h2t(node_attr, adj, w1, b1, w2, b2,
                             out_dtype=mxu_dtype)
    return bert_gcn_project(bert_pooled, h2t, node_attr.shape[0])


def reference_forward(bert_pooled, node_attr, adj, w1, b1, w2, b2):
    h1 = adj @ (node_attr @ w1) + b1
    h1 = jnp.maximum(h1, 0.0)
    h2 = adj @ (h1 @ w2) + b2
    return bert_pooled @ h2.T


if __name__ == "__main__":
    # Small shapes consistent with the module's forward.
    B = 8     # batch
    D = 64    # hidden_dim (BERT pooled output size / GCN out_feature)
    L = 16    # label_num  (number of graph nodes)
    E = 32    # GCN_emb_size
    H = 32    # GCN_hidden_size

    key = jax.random.PRNGKey(0)
    k_bert, k_node, k_adj, k_w1, k_b1, k_w2, k_b2 = jax.random.split(key, 7)

    # Stand-in for bert(x, mask)[1]
    bert_pooled = jax.random.normal(k_bert, (B, D), dtype=jnp.float32)

    # Node_attr ~ randn(label_num, GCN_emb_size)
    node_attr = jax.random.normal(k_node, (L, E), dtype=jnp.float32)

    # Deterministic (row-normalized) adjacency with self-loops.
    adj_raw = (jax.random.uniform(k_adj, (L, L)) > 0.6).astype(jnp.float32)
    adj_raw = adj_raw + jnp.eye(L, dtype=jnp.float32)
    adj = adj_raw / jnp.sum(adj_raw, axis=1, keepdims=True)

    # GraphConvolution init: uniform(-stdv, stdv), stdv = 1/sqrt(out_features)
    stdv1 = 1.0 / math.sqrt(H)
    w1 = jax.random.uniform(k_w1, (E, H), minval=-stdv1, maxval=stdv1,
                            dtype=jnp.float32)
    b1 = jax.random.uniform(k_b1, (1, H), minval=-stdv1, maxval=stdv1,
                            dtype=jnp.float32)
    stdv2 = 1.0 / math.sqrt(D)
    w2 = jax.random.uniform(k_w2, (H, D), minval=-stdv2, maxval=stdv2,
                            dtype=jnp.float32)
    b2 = jax.random.uniform(k_b2, (1, D), minval=-stdv2, maxval=stdv2,
                            dtype=jnp.float32)

    ref = reference_forward(bert_pooled, node_attr, adj, w1, b1, w2, b2)

    # f32 path (tight tolerance).
    out = bert_gcn_forward(bert_pooled, node_attr, adj, w1, b1, w2, b2)
    out = jax.block_until_ready(out)
    assert out.shape == (B, L), out.shape
    assert jnp.allclose(out, ref, atol=1e-4, rtol=1e-4), \
        float(jnp.max(jnp.abs(out - ref)))

    # bf16 MXU-feeding path (v6e/v7x suggestion), f32 accumulation.
    out_bf16 = bert_gcn_forward(bert_pooled, node_attr, adj, w1, b1, w2, b2,
                                mxu_dtype=jnp.bfloat16)
    out_bf16 = jax.block_until_ready(out_bf16)
    assert out_bf16.shape == (B, L), out_bf16.shape
    assert jnp.allclose(out_bf16, ref, atol=5e-2, rtol=5e-2), \
        float(jnp.max(jnp.abs(out_bf16 - ref)))

    print("KERNEL_OK")
</pallas_src>

<mosaic_0001>
module attributes {stable_mosaic.version = 11 : i64} {
  func.func @gcn_h2t_kernel(%arg0: memref<32x128xf32, #tpu.memory_space<vmem>>, %arg1: memref<128x128xf32, #tpu.memory_space<vmem>>, %arg2: memref<32x32xf32, #tpu.memory_space<vmem>>, %arg3: memref<32x1xf32, #tpu.memory_space<vmem>>, %arg4: memref<64x32xf32, #tpu.memory_space<vmem>>, %arg5: memref<64x1xf32, #tpu.memory_space<vmem>>, %arg6: memref<64x128xf32, #tpu.memory_space<vmem>>) attributes {dimension_semantics = [], scalar_prefetch = 0 : i64, scratch_operands = 0 : i64, tpu.core_type = #tpu.core_type<tc>} {
    %c0 = arith.constant 0 : index
    %c0_0 = arith.constant 0 : index
    %0 = vector.load %arg2[%c0, %c0_0] : memref<32x32xf32, #tpu.memory_space<vmem>>, vector<32x32xf32>
    %c0_1 = arith.constant 0 : index
    %c0_2 = arith.constant 0 : index
    %1 = vector.load %arg0[%c0_1, %c0_2] : memref<32x128xf32, #tpu.memory_space<vmem>>, vector<32x128xf32>
    %cst = arith.constant dense<0.000000e+00> : vector<32x128xf32>
    %2 = tpu.matmul %0, %1, %cst {dimension_numbers = #tpu.dot_dimension_numbers<[1], [0], [0], [1], [0, 0, 1, 1], [], []>} : vector<32x32xf32>, vector<32x128xf32>, vector<32x128xf32> -> vector<32x128xf32>
    %c0_3 = arith.constant 0 : index
    %c0_4 = arith.constant 0 : index
    %3 = vector.load %arg1[%c0_3, %c0_4] : memref<128x128xf32, #tpu.memory_space<vmem>>, vector<128x128xf32>
    %cst_5 = arith.constant dense<0.000000e+00> : vector<32x128xf32>
    %4 = tpu.matmul %2, %3, %cst_5 {dimension_numbers = #tpu.dot_dimension_numbers<[1], [0], [0], [1], [0, 0, 1, 1], [], []>} : vector<32x128xf32>, vector<128x128xf32>, vector<32x128xf32> -> vector<32x128xf32>
    %c0_6 = arith.constant 0 : index
    %c0_7 = arith.constant 0 : index
    %5 = vector.load %arg3[%c0_6, %c0_7] : memref<32x1xf32, #tpu.memory_space<vmem>>, vector<32x1xf32>
    %6 = vector.broadcast %5 : vector<32x1xf32> to vector<32x128xf32>
    %7 = arith.addf %4, %6 : vector<32x128xf32>
    %cst_8 = arith.constant 0.000000e+00 : f32
    %8 = vector.broadcast %cst_8 : f32 to vector<32x128xf32>
    %9 = arith.maximumf %7, %8 : vector<32x128xf32>
    %c0_9 = arith.constant 0 : index
    %c0_10 = arith.constant 0 : index
    %10 = vector.load %arg4[%c0_9, %c0_10] : memref<64x32xf32, #tpu.memory_space<vmem>>, vector<64x32xf32>
    %cst_11 = arith.constant dense<0.000000e+00> : vector<64x128xf32>
    %11 = tpu.matmul %10, %9, %cst_11 {dimension_numbers = #tpu.dot_dimension_numbers<[1], [0], [0], [1], [0, 0, 1, 1], [], []>} : vector<64x32xf32>, vector<32x128xf32>, vector<64x128xf32> -> vector<64x128xf32>
    %c0_12 = arith.constant 0 : index
    %c0_13 = arith.constant 0 : index
    %12 = vector.load %arg1[%c0_12, %c0_13] : memref<128x128xf32, #tpu.memory_space<vmem>>, vector<128x128xf32>
    %cst_14 = arith.constant dense<0.000000e+00> : vector<64x128xf32>
    %13 = tpu.matmul %11, %12, %cst_14 {dimension_numbers = #tpu.dot_dimension_numbers<[1], [0], [0], [1], [0, 0, 1, 1], [], []>} : vector<64x128xf32>, vector<128x128xf32>, vector<64x128xf32> -> vector<64x128xf32>
    %c0_15 = arith.constant 0 : index
    %c0_16 = arith.constant 0 : index
    %14 = vector.load %arg5[%c0_15, %c0_16] : memref<64x1xf32, #tpu.memory_space<vmem>>, vector<64x1xf32>
    %15 = vector.broadcast %14 : vector<64x1xf32> to vector<64x128xf32>
    %16 = arith.addf %13, %15 : vector<64x128xf32>
    %c0_17 = arith.constant 0 : index
    %c0_18 = arith.constant 0 : index
    %17 = vector.load %arg6[%c0_17, %c0_18] : memref<64x128xf32, #tpu.memory_space<vmem>>, vector<64x128xf32>
    tpu.vector_store %arg6[%c0_17, %c0_18], %16 {strides = array<i32>} : memref<64x128xf32, #tpu.memory_space<vmem>>, vector<64x128xf32>,
    return
  }
}

</mosaic_0001>

<bundles_post_ra>
// kernel: tpu_custom_call.1
= control target key start
LH: loop header
LB: loop body
LE: loop exit
PB: predicated region body
PF: predicated region fallthrough
CT: control target
= control target key end

     0   :  { %11 = vsyncpa [#allocation3], 0  ;;  %s624_s0 = inlined_call_operand.vmem [shape: f32[32,128], index: 0, kind: input, shape index: {}]   ;;  %s625_s1 = inlined_call_operand.vmem [shape: f32[128,128], index: 1, kind: input, shape index: {}]   ;;  %s626_s2 = inlined_call_operand.hbm [shape: f32[32,32], index: 2, kind: input, shape index: {}]   ;;  %s627_s3 = inlined_call_operand.vmem [shape: f32[32,1], index: 3, kind: input, shape index: {}]   ;;  %s628_s4 = inlined_call_operand.vmem [shape: f32[64,32], index: 4, kind: input, shape index: {}]   ;;  %s629_s5 = inlined_call_operand.vmem [shape: f32[64,1], index: 5, kind: input, shape index: {}]   ;;  %s630_s6 = inlined_call_operand.hbm [shape: f32[64,128], index: 6, kind: output, shape index: {}]  }
   0x1   :  { %12 = vsyncpa [#allocation4], 0  ;;  %s21_s23 = sshll.u32 %s626_s2, 4  ;;  %s440_s24 = smov [#allocation2]   ;;  %s22_s23 = int_to_ptr.hbm [resolvable:$true] %s21_s23 }
   0x2   :  { %s23_s25 = sshll.u32 %s440_s24, 4  ;;  %s441_s26 = smov 128   ;;  %s24_s25 = int_to_ptr.vmem [resolvable:$true] %s23_s25 }
   0x3   :  { %s442_s27 = smov 8  }
   0x4   :  { %29 = dma.hbm_to_vmem [thread:$0]  %s22_s23, 512, %s24_s25, [#allocation3], %s441_s26, %s441_s26, %s442_s27  }
   0x5   :  { %436 = dma.done.wait [#allocation3], 512  }
   0x6   :  { %437 = vsyncadd [#allocation3], 4294966784  ;;  %v47_v0 = vld [vmem:[%s624_s0 + $0x18] sm:$0xff]  ;;  %v46_v1 = vld [vmem:[%s624_s0 + $0x10] sm:$0xff]  ;;  %vm48_vm0 = vcmask 261120   ;;  %v443_v26 = vmov 0  }
   0x7   :  { %73 = vmatpush.msra.mxu0 %v47_v0  ;;  %v45_v2 = vld [vmem:[%s624_s0 + $0x8] sm:$0xff]  ;;  %v105_v3 = vld [vmem:[%s625_s1 + $0x78] sm:$0xff]  ;;  %v104_v4 = vld [vmem:[%s625_s1 + $0x70] sm:$0xff]  ;;  %386 = vset.pattern.permute.xlu1 %v443_v26 }
   0x8   :  { %130 = vmatpush.msra.mxu1 %v105_v3  ;;  %v44_v5 = vld [vmem:[%s624_s0] sm:$0xff]  ;;  %v103_v6 = vld [vmem:[%s625_s1 + $0x68] sm:$0xff]  ;;  %364 = vmatpush.msra.mxu3 %v105_v3  ;;  %v101_v9 = vld [vmem:[%s625_s1 + $0x58] sm:$0xff] }
   0x9   :  { %74 = vmatpush.msra.mxu0 %v46_v1  ;;  %v40_v7 = vld [vmem:[#allocation2] sm:$0xff]  ;;  %v100_v10 = vld [vmem:[%s625_s1 + $0x50] sm:$0xff]  ;;  %v99_v11 = vld [vmem:[%s625_s1 + $0x48] sm:$0xff]  ;;  %385 = vset.pattern.permute.xlu0 %v443_v26 }
   0xa   :  { %131 = vmatpush.msra.mxu1 %v104_v4  ;;  %v102_v8 = vld [vmem:[%s625_s1 + $0x60] sm:$0xff]  ;;  %365 = vmatpush.msra.mxu3 %v104_v4  ;;  %v41_v12 = vld [vmem:[#allocation2 + $0x8] sm:$0xff]  ;;  %v97_v14 = vld [vmem:[%s625_s1 + $0x38] sm:$0xff] }
   0xb   :  { %75 = vmatpush.msra.mxu0 %v45_v2  ;;  %v98_v13 = vld [vmem:[%s625_s1 + $0x40] sm:$0xff]  ;;  %v96_v15 = vld [vmem:[%s625_s1 + $0x30] sm:$0xff]  ;;  %v95_v16 = vld [vmem:[%s625_s1 + $0x28] sm:$0xff]  ;;  %387 = vset.pattern.permute.xlu2 %v443_v26 }
   0xc   :  { %132 = vmatpush.msra.mxu1 %v103_v6  ;;  %366 = vmatpush.msra.mxu3 %v103_v6  ;;  %v42_v17 = vld [vmem:[#allocation2 + $0x10] sm:$0xff]  ;;  %v94_v18 = vld [vmem:[%s625_s1 + $0x20] sm:$0xff]  ;;  %v93_v19 = vld [vmem:[%s625_s1 + $0x18] sm:$0xff] }
   0xd   :  { %76 = vmatpush.msra.mxu0 %v44_v5  ;;  %v92_v20 = vld [vmem:[%s625_s1 + $0x10] sm:$0xff]  ;;  %v91_v21 = vld [vmem:[%s625_s1 + $0x8] sm:$0xff]  ;;  %v43_v22 = vld [vmem:[#allocation2 + $0x18] sm:$0xff] }
   0xe   :  { %352 = vmatmul.msk.f32.vlgmr.msra.gmra.mxu0 %vm48_vm0, %v40_v7  ;;  %133 = vmatpush.msra.mxu1 %v102_v8  ;;  %v90_v23 = vld [vmem:[%s625_s1] sm:$0xff]  ;;  %v107_v24 = vld [vmem:[%s627_s3 + $0x8] sm:$0xff]  ;;  %v109_v25 = vld [vmem:[%s627_s3 + $0x18] sm:$0xff] }
   0xf   :  { %284 = vmatpush.msrb.mxu0 %v105_v3  ;;  %367 = vmatpush.msra.mxu3 %v102_v8  ;;  %v106_v27 = vld [vmem:[%s627_s3] sm:$0xff]  ;;  %v108_v28 = vld [vmem:[%s627_s3 + $0x10] sm:$0xff]  ;;  %v239_v30 = vld [vmem:[%s629_s5 + $0x18] sm:$0xff]  ;;  %s339_s3 = sshll.u32 %s630_s6, 4  ;;  %s340_s3 = int_to_ptr.hbm [resolvable:$true] %s339_s3 }
  0x10   :  { %134 = vmatpush.msra.mxu1 %v101_v9  ;;  %117 = vperm.xlu1 %386, %v107_v24   ;;  %v238_v29 = vld [vmem:[%s629_s5 + $0x10] sm:$0xff]  ;;  %v241_v31 = vld [vmem:[%s629_s5 + $0x28] sm:$0xff]  ;;  %v163_v53 = vld [vmem:[%s628_s4] sm:$0xff] }
  0x11   :  { %285 = vmatpush.msrb.mxu0 %v104_v4  ;;  %368 = vmatpush.msra.mxu3 %v101_v9  ;;  %v242_v32 = vld [vmem:[%s629_s5 + $0x30] sm:$0xff]  ;;  %v164_v54 = vld [vmem:[%s628_s4 + $0x8] sm:$0xff]  ;;  %v166_v56 = vld [vmem:[%s628_s4 + $0x18] sm:$0xff] }
  0x12   :  { %135 = vmatpush.msra.mxu1 %v100_v10  ;;  %127 = vperm.xlu0 %385, %v109_v25   ;;  %v165_v55 = vld [vmem:[%s628_s4 + $0x10] sm:$0xff]  ;;  %v167_v57 = vld [vmem:[%s628_s4 + $0x20] sm:$0xff]  ;;  %v168_v58 = vld [vmem:[%s628_s4 + $0x28] sm:$0xff] }
  0x13   :  { %286 = vmatpush.msrb.mxu0 %v103_v6  ;;  %369 = vmatpush.msra.mxu3 %v100_v10  ;;  %v169_v59 = vld [vmem:[%s628_s4 + $0x30] sm:$0xff]  ;;  %v170_v60 = vld [vmem:[%s628_s4 + $0x38] sm:$0xff]  ;;  %v236_v62 = vld [vmem:[%s629_s5] sm:$0xff] }
  0x14   :  { %136 = vmatpush.msra.mxu1 %v99_v11  ;;  %246 = vperm.xlu2 %387, %v236_v62   ;;  %v237_v0 = vld [vmem:[%s629_s5 + $0x8] sm:$0xff]  ;;  %v240_v3 = vld [vmem:[%s629_s5 + $0x20] sm:$0xff]  ;;  %v243_v4 = vld [vmem:[%s629_s5 + $0x38] sm:$0xff]  ;;  %s444_s5 = smov [#allocation5]  }
  0x15   :  { %287 = vmatpush.msrb.mxu0 %v102_v8  ;;  %370 = vmatpush.msra.mxu3 %v99_v11  ;;  %s337_s2 = sshll.u32 %s444_s5, 4  ;;  %s338_s2 = int_to_ptr.vmem [resolvable:$true] %s337_s2 }
  0x16   :  { %353 = vmatmul.msk.f32.gmra.mxu0 %vm48_vm0, %v41_v12  ;;  %137 = vmatpush.msra.mxu1 %v98_v13 }
  0x17   :  { %288 = vmatpush.msrb.mxu0 %v101_v9  ;;  %371 = vmatpush.msra.mxu3 %v98_v13 }
  0x18   :  { %138 = vmatpush.msra.mxu1 %v97_v14  ;;  %112 = vperm.xlu1 %386, %v106_v27  }
  0x19   :  { %289 = vmatpush.msrb.mxu0 %v100_v10  ;;  %372 = vmatpush.msra.mxu3 %v97_v14 }
  0x1a   :  { %139 = vmatpush.msra.mxu1 %v96_v15  ;;  %122 = vperm.xlu0 %385, %v108_v28  }
  0x1b   :  { %290 = vmatpush.msrb.mxu0 %v99_v11  ;;  %373 = vmatpush.msra.mxu3 %v96_v15 }
  0x1c   :  { %140 = vmatpush.msra.mxu1 %v95_v16  ;;  %251 = vperm.xlu2 %387, %v237_v0  }
  0x1d   :  { %291 = vmatpush.msrb.mxu0 %v98_v13  ;;  %374 = vmatpush.msra.mxu3 %v95_v16 }
  0x1e   :  { %354 = vmatmul.msk.f32.gmra.mxu0 %vm48_vm0, %v42_v17  ;;  %141 = vmatpush.msra.mxu1 %v94_v18 }
  0x1f   :  { %292 = vmatpush.msrb.mxu0 %v97_v14  ;;  %375 = vmatpush.msra.mxu3 %v94_v18 }
  0x20   :  { %142 = vmatpush.msra.mxu1 %v93_v19  ;;  %261 = vperm.xlu1 %386, %v239_v30  }
  0x21   :  { %293 = vmatpush.msrb.mxu0 %v96_v15  ;;  %376 = vmatpush.msra.mxu3 %v93_v19 }
  0x22   :  { %143 = vmatpush.msra.mxu1 %v92_v20  ;;  %256 = vperm.xlu0 %385, %v238_v29  }
  0x23   :  { %294 = vmatpush.msrb.mxu0 %v95_v16  ;;  %377 = vmatpush.msra.mxu3 %v92_v20 }
  0x24   :  { %144 = vmatpush.msra.mxu1 %v91_v21  ;;  %266 = vperm.xlu2 %387, %v240_v3  }
  0x25   :  { %295 = vmatpush.msrb.mxu0 %v94_v18  ;;  %378 = vmatpush.msra.mxu3 %v91_v21 }
  0x26   :  { %355 = vmatmul.msk.f32.gmra.mxu0 %vm48_vm0, %v43_v22  ;;  %145 = vmatpush.msra.mxu1 %v90_v23 }
  0x27   :  { %296 = vmatpush.msrb.mxu0 %v93_v19  ;;  %379 = vmatpush.msra.mxu3 %v90_v23 }
  0x28   :  { %276 = vperm.xlu1 %386, %v242_v32  }
  0x29   :  { %297 = vmatpush.msrb.mxu0 %v92_v20 }
  0x2a   :  { %271 = vperm.xlu0 %385, %v241_v31  }
  0x2b   :  { %298 = vmatpush.msrb.mxu0 %v91_v21 }
  0x2c   :  { %281 = vperm.xlu2 %387, %v243_v4  }
  0x2d   :  { %299 = vmatpush.msrb.mxu0 %v90_v23 }
  0x6e   :  { %v247_v9 = vpop.permute.xlu2 %246 }
  0x76   :  { %v252_v12 = vpop.permute.xlu2 %251 }
  0x7e   :  { %v267_v21 = vpop.permute.xlu2 %266 }
  0x82   :  { %v118_v40 = vpop.permute.xlu1 %117 }
  0x84   :  { %v128_v39 = vpop.permute.xlu0 %127 }
  0x86   :  { %v282_v30 = vpop.permute.xlu2 %281 }
  0x8a   :  { %v113_v46 = vpop.permute.xlu1 %112 }
  0x8b   :  { %v78_v33 = vpop.f32.mrf.mxu0 }
  0x8c   :  { %146 = vmatmul.f32.vlgmr.msra.gmra.mxu1 %v78_v33  ;;  %v123_v42 = vpop.permute.xlu0 %122 }
  0x92   :  { %v262_v18 = vpop.permute.xlu1 %261 }
  0x93   :  { %v81_v34 = vpop.f32.mrf.mxu0 }
  0x94   :  { %149 = vmatmul.f32.gmra.mxu1 %v81_v34  ;;  %v257_v15 = vpop.permute.xlu0 %256 }
  0x9a   :  { %v277_v27 = vpop.permute.xlu1 %276 }
  0x9b   :  { %v84_v35 = vpop.f32.mrf.mxu0 }
  0x9c   :  { %152 = vmatmul.f32.gmra.mxu1 %v84_v35  ;;  %v272_v24 = vpop.permute.xlu0 %271 }
  0xa3   :  { %v87_v36 = vpop.f32.mrf.mxu0 }
  0xa4   :  { %155 = vmatmul.f32.gmra.mxu1 %v87_v36 }
 0x109   :  { %v147_v37 = vpop.f32.mrf.mxu1 }
 0x10a   :  { %v148_v49 = vadd.f32 %v147_v37, %v113_v46 }
 0x10c   :  { %v159_v52 = vmax.f32 %v148_v49, 0.0 }
 0x111   :  { %v150_v38 = vpop.f32.mrf.mxu1 }
 0x112   :  { %v151_v47 = vadd.f32 %v150_v38, %v118_v40 }
 0x114   :  { %v160_v51 = vmax.f32 %v151_v47, 0.0 }
 0x119   :  { %v153_v41 = vpop.f32.mrf.mxu1 }
 0x11a   :  { %v154_v44 = vadd.f32 %v153_v41, %v123_v42 }
 0x11c   :  { %v161_v50 = vmax.f32 %v154_v44, 0.0 }
 0x121   :  { %v156_v43 = vpop.f32.mrf.mxu1 }
 0x122   :  { %v157_v45 = vadd.f32 %v156_v43, %v128_v39 }
 0x124   :  { %v162_v48 = vmax.f32 %v157_v45, 0.0 }
 0x126   :  { %207 = vmatpush.msra.mxu2 %v162_v48 }
 0x128   :  { %208 = vmatpush.msra.mxu2 %v161_v50 }
 0x12a   :  { %209 = vmatpush.msra.mxu2 %v160_v51 }
 0x12c   :  { %210 = vmatpush.msra.mxu2 %v159_v52 }
 0x12d   :  { %356 = vmatmul.msk.f32.vlgmr.msra.gmra.mxu2 %vm48_vm0, %v163_v53 }
 0x135   :  { %357 = vmatmul.msk.f32.gmra.mxu2 %vm48_vm0, %v164_v54 }
 0x13d   :  { %358 = vmatmul.msk.f32.gmra.mxu2 %vm48_vm0, %v165_v55 }
 0x145   :  { %359 = vmatmul.msk.f32.gmra.mxu2 %vm48_vm0, %v166_v56 }
 0x14d   :  { %360 = vmatmul.msk.f32.gmra.mxu2 %vm48_vm0, %v167_v57 }
 0x155   :  { %361 = vmatmul.msk.f32.gmra.mxu2 %vm48_vm0, %v168_v58 }
 0x15d   :  { %362 = vmatmul.msk.f32.gmra.mxu2 %vm48_vm0, %v169_v59 }
 0x165   :  { %363 = vmatmul.msk.f32.gmra.mxu2 %vm48_vm0, %v170_v60 }
 0x1b0   :  { %v212_v61 = vpop.f32.mrf.mxu2 }
 0x1b1   :  { %300 = vmatmul.f32.vlgmr.msrb.gmra.mxu0 %v212_v61 }
 0x1b8   :  { %v215_v63 = vpop.f32.mrf.mxu2 }
 0x1b9   :  { %303 = vmatmul.f32.gmra.mxu0 %v215_v63 }
 0x1c0   :  { %v218_v1 = vpop.f32.mrf.mxu2 }
 0x1c1   :  { %306 = vmatmul.f32.gmra.mxu0 %v218_v1 }
 0x1c8   :  { %v221_v2 = vpop.f32.mrf.mxu2 }
 0x1c9   :  { %309 = vmatmul.f32.vlgmr.msra.gmra.mxu3 %v221_v2 }
 0x1d0   :  { %v224_v5 = vpop.f32.mrf.mxu2 }
 0x1d1   :  { %312 = vmatmul.f32.gmra.mxu3 %v224_v5 }
 0x1d8   :  { %v227_v6 = vpop.f32.mrf.mxu2 }
 0x1d9   :  { %315 = vmatmul.f32.gmra.mxu3 %v227_v6 }
 0x1e0   :  { %v230_v7 = vpop.f32.mrf.mxu2 }
 0x1e1   :  { %318 = vmatmul.f32.gmra.mxu3 %v230_v7 }
 0x1e8   :  { %v233_v8 = vpop.f32.mrf.mxu2 }
 0x1e9   :  { %321 = vmatmul.f32.gmra.mxu3 %v233_v8 }
 0x22e   :  { %v301_v10 = vpop.f32.mrf.mxu0 }
 0x22f   :  { %v302_v11 = vadd.f32 %v301_v10, %v247_v9 }
 0x231   :  { %325 = vst [vmem:[#allocation5] sm:$0xff] %v302_v11 }
 0x236   :  { %v304_v13 = vpop.f32.mrf.mxu0 }
 0x237   :  { %v305_v14 = vadd.f32 %v304_v13, %v252_v12 }
 0x239   :  { %326 = vst [vmem:[#allocation5 + $0x8] sm:$0xff] %v305_v14 }
 0x23e   :  { %v307_v16 = vpop.f32.mrf.mxu0 }
 0x23f   :  { %v308_v17 = vadd.f32 %v307_v16, %v257_v15 }
 0x241   :  { %327 = vst [vmem:[#allocation5 + $0x10] sm:$0xff] %v308_v17 }
 0x24c   :  { %v310_v19 = vpop.f32.mrf.mxu3 }
 0x24d   :  { %v311_v20 = vadd.f32 %v310_v19, %v262_v18 }
 0x24f   :  { %328 = vst [vmem:[#allocation5 + $0x18] sm:$0xff] %v311_v20 }
 0x254   :  { %v313_v22 = vpop.f32.mrf.mxu3 }
 0x255   :  { %v314_v23 = vadd.f32 %v313_v22, %v267_v21 }
 0x257   :  { %329 = vst [vmem:[#allocation5 + $0x20] sm:$0xff] %v314_v23 }
 0x25c   :  { %v316_v25 = vpop.f32.mrf.mxu3 }
 0x25d   :  { %v317_v26 = vadd.f32 %v316_v25, %v272_v24 }
 0x25f   :  { %330 = vst [vmem:[#allocation5 + $0x28] sm:$0xff] %v317_v26 }
 0x264   :  { %v319_v28 = vpop.f32.mrf.mxu3 }
 0x265   :  { %v320_v29 = vadd.f32 %v319_v28, %v277_v27 }
 0x267   :  { %331 = vst [vmem:[#allocation5 + $0x30] sm:$0xff] %v320_v29 }
 0x26c   :  { %v322_v31 = vpop.f32.mrf.mxu3 }
 0x26d   :  { %v323_v32 = vadd.f32 %v322_v31, %v282_v30 }
 0x26f   :  { %332 = vst [vmem:[#allocation5 + $0x38] sm:$0xff] %v323_v32 }
 0x270   :  { %345 = dma.vmem_to_hbm [thread:$0]  %s338_s2, 1024, %s340_s3, [#allocation4], %s441_s26, %s441_s26, %s442_s27  }
 0x271   :  { %438 = dma.done.wait [#allocation4], 1024  }
 0x272   :  { %439 = vsyncadd [#allocation4], 4294966272 }
 0x273   :  { %350 = vsyncpa [#allocation3], 1 }
 0x274   :  { %351 = vsyncpa [#allocation4], 1 }

</bundles_post_ra>
